<compile_context>
chip_gen: v6e
topology: v6e:2x2x1
jax: 0.10.0
libtpu: 0.0.40
codegen_flags: <defaults>
</compile_context>

<pallas_src>
import jax
import jax.numpy as jnp
from jax.experimental import pallas as pl
from jax.experimental.pallas import tpu as pltpu


def _round_up(a, m):
    return ((a + m - 1) // m) * m


def _cond_kernel(units_ref, fv_ref, wu_ref, wfv_ref, bias_ref, out_ref):
    """One (batch, time-tile) step of the fused conditioning computation.

    units_ref : (Tt, C)   mxu dtype (bf16 by default)
    fv_ref    : (Tt, 2)   f32  -- col 0 = log1p(f0/700), col 1 = volume
    wu_ref    : (C, H)    mxu dtype (constant across the grid)
    wfv_ref   : (2, H)    f32  -- row 0 = f0_embed W, row 1 = volume_embed W
    bias_ref  : (1, H)    f32  -- b_unit + b_f0 + b_vol + spk_embed + aug_shift
    out_ref   : (Tt, H)
    """
    # unit_embed: MXU matmul, f32 accumulation.
    acc = jnp.dot(units_ref[...], wu_ref[...],
                  preferred_element_type=jnp.float32)
    # f0_embed / volume_embed: Linear(1, H) == rank-1 broadcast multiplies (VPU).
    fv = fv_ref[...]                                   # (Tt, 2) f32
    acc = acc + fv[:, 0:1] * wfv_ref[0:1, :]           # log1p(f0/700) * W_f0
    acc = acc + fv[:, 1:2] * wfv_ref[1:2, :]           # volume        * W_vol
    # folded biases + per-batch speaker / aug-shift contribution.
    acc = acc + bias_ref[...]

    out_ref[...] = acc.astype(out_ref.dtype)


# Cache whether pipeline_mode=pl.Buffered(1) is accepted by this JAX build, so
# a failed attempt is not re-traced on every call.
_SINGLE_BUFFER_WEIGHTS_OK = True


def unit2melv2_cond(units, f0, volume, params, spk_id=None, aug_shift=None,
                    spk_mix_dict=None, *, t_tile=1024,
                    mxu_dtype=jnp.bfloat16, out_dtype=jnp.bfloat16):
    """Pallas implementation of the Unit2MelV2 conditioning stage.

    units  : (B, T, C) float
    f0     : (B, T, 1) float (Hz, >= 0)
    volume : (B, T, 1) float
    t_tile : target time-tile (rows per MXU push), rounded to a multiple of 8
             and capped at round_up(T, 8). 1024 amortizes the ~0.35 us fixed
             per-grid-step overhead; the grid uses cdiv so T need not divide.
    """
    global _SINGLE_BUFFER_WEIGHTS_OK

    B, T, C = units.shape
    H = params["unit_w"].shape[1]

    # ---- effective tile: multiple of 8 sublanes, capped near T -------------
    t_eff = max(8, min(_round_up(int(t_tile), 8), _round_up(T, 8)))

    # ---- JAX glue: fold biases + embedding gather + aug-shift linear ------
    bias = params["unit_b"] + params["f0_b"] + params["vol_b"]          # (H,)
    spkaug = jnp.broadcast_to(bias, (B, H)).astype(jnp.float32)
    if params.get("spk_table") is not None:
        if spk_mix_dict is not None:
            for k, v in spk_mix_dict.items():
                spkaug = spkaug + v * params["spk_table"][int(k) - 1][None, :]
        elif spk_id is not None:
            # nn.Embedding(n_spk, H) lookup of (spk_id - 1), broadcast over T.
            # NOTE: spk_id is expected 1-indexed and >= 1 (PyTorch semantics).
            spkaug = spkaug + params["spk_table"][spk_id[:, 0] - 1]
    if aug_shift is not None and params.get("aug_w") is not None:
        # nn.Linear(1, H, bias=False) on (aug_shift / 5), broadcast over T.
        spkaug = spkaug + (aug_shift[:, 0] / 5.0) @ params["aug_w"]
    spkaug = spkaug[:, None, :]                                          # (B, 1, H)

    # ---- pack log1p(f0/700) and volume into one (B, T, 2) f32 operand ------
    fv = jnp.concatenate(
        [jnp.log1p(f0.astype(jnp.float32) * (1.0 / 700.0)),
         volume.astype(jnp.float32)], axis=-1)                          # (B, T, 2)
    wfv = jnp.concatenate([params["f0_w"], params["vol_w"]],
                          axis=0).astype(jnp.float32)                   # (2, H)

    # ---- matmul operands to MXU dtype; VPU path stays f32 -----------------
    units_mxu = units.astype(mxu_dtype)
    wu_mxu = params["unit_w"].astype(mxu_dtype)

    grid = (B, pl.cdiv(T, t_eff))      # ragged last time block handled by Pallas
    sq = pl.Squeezed()

    def call(single_buffer_weights):
        # Constant index maps mean the weight blocks are DMA'd only once;
        # Buffered(1) additionally drops their second VMEM buffer.
        wkw = ({"pipeline_mode": pl.Buffered(1)}
               if single_buffer_weights else {})
        return pl.pallas_call(
            _cond_kernel,
            out_shape=jax.ShapeDtypeStruct((B, T, H), out_dtype),
            grid_spec=pltpu.PrefetchScalarGridSpec(
                num_scalar_prefetch=0,
                grid=grid,
                in_specs=[
                    pl.BlockSpec((sq, t_eff, C), lambda b, t: (b, t, 0)),      # units
                    pl.BlockSpec((sq, t_eff, 2), lambda b, t: (b, t, 0)),      # [g, vol]
                    pl.BlockSpec((C, H), lambda b, t: (0, 0), **wkw),          # unit W
                    pl.BlockSpec((2, H), lambda b, t: (0, 0), **wkw),          # f0/vol W
                    pl.BlockSpec((sq, 1, H), lambda b, t: (b, 0, 0)),          # bias+spk+aug
                ],
                out_specs=pl.BlockSpec((sq, t_eff, H), lambda b, t: (b, t, 0)),
            ),
            compiler_params=pltpu.CompilerParams(
                dimension_semantics=("parallel", "parallel")),
        )(units_mxu, fv, wu_mxu, wfv, spkaug)

    if _SINGLE_BUFFER_WEIGHTS_OK:
        try:
            return call(True)
        except Exception:
            # pipeline_mode / Buffered(1) not supported on the main pipeline in
            # this build -- fall back to default double-buffered weights.
            _SINGLE_BUFFER_WEIGHTS_OK = False
    return call(False)


def init_params(key, input_channel, n_hidden, n_spk, use_pitch_aug=True):
    """Deterministic synthetic parameters (shapes from Unit2MelV2.__init__)."""
    ks = jax.random.split(key, 8)
    s = 0.1
    return {
        # nn.Linear(input_channel, n_hidden): store W^T as (C, H)
        "unit_w": s * jax.random.normal(ks[0], (input_channel, n_hidden), jnp.float32),
        "unit_b": s * jax.random.normal(ks[1], (n_hidden,), jnp.float32),
        # nn.Linear(1, n_hidden): store W^T as (1, H)
        "f0_w": s * jax.random.normal(ks[2], (1, n_hidden), jnp.float32),
        "f0_b": s * jax.random.normal(ks[3], (n_hidden,), jnp.float32),
        "vol_w": s * jax.random.normal(ks[4], (1, n_hidden), jnp.float32),
        "vol_b": s * jax.random.normal(ks[5], (n_hidden,), jnp.float32),
        # nn.Embedding(n_spk, n_hidden)
        "spk_table": s * jax.random.normal(ks[6], (n_spk, n_hidden), jnp.float32),
        # nn.Linear(1, n_hidden, bias=False) (use_pitch_aug=True)
        "aug_w": (s * jax.random.normal(ks[7], (1, n_hidden), jnp.float32)
                  if use_pitch_aug else None),
    }


def ref_forward(units, f0, volume, params, spk_id, aug_shift,
                mxu_dtype=jnp.float32):
    """Pure-JAX reference reproducing the PyTorch semantics.

    mxu_dtype emulates the kernel's bf16 matmul operands (values cast to bf16,
    products/accumulation in f32) for a tight numerical check.
    """
    u = units.astype(mxu_dtype).astype(jnp.float32)
    wu = params["unit_w"].astype(mxu_dtype).astype(jnp.float32)
    x = u @ wu + params["unit_b"]
    x = x + jnp.log1p(f0 / 700.0) @ params["f0_w"] + params["f0_b"]
    x = x + volume @ params["vol_w"] + params["vol_b"]
    x = x + params["spk_table"][spk_id[:, 0] - 1][:, None, :]   # spk_embed(spk_id - 1)
    x = x + (aug_shift / 5.0) @ params["aug_w"]                  # aug_shift_embed
    return x


if __name__ == "__main__":
    # Small shapes consistent with the module's forward: B x n_frames x n_unit
    B, C, H, N_SPK = 2, 8, 32, 4

    key = jax.random.PRNGKey(0)
    kp, ku, kf, kv, ks, ka, ku2, kf2, kv2 = jax.random.split(key, 9)

    params = init_params(kp, input_channel=C, n_hidden=H, n_spk=N_SPK,
                         use_pitch_aug=True)

    spk_id = jax.random.randint(ks, (B, 1), 1, N_SPK + 1)                  # 1-indexed
    aug_shift = jax.random.normal(ka, (B, 1, 1), jnp.float32)

    # ---- run 1: ragged single tile (T=50), f32 MXU + f32 out, tight check ---
    T1 = 50
    units1 = jax.random.normal(ku, (B, T1, C), jnp.float32)
    f01 = 100.0 + 400.0 * jax.random.uniform(kf, (B, T1, 1), jnp.float32)   # Hz > 0
    vol1 = jax.random.uniform(kv, (B, T1, 1), jnp.float32)

    out1 = unit2melv2_cond(units1, f01, vol1, params, spk_id=spk_id,
                           aug_shift=aug_shift,
                           mxu_dtype=jnp.float32, out_dtype=jnp.float32)
    out1 = jax.block_until_ready(out1)
    ref1 = ref_forward(units1, f01, vol1, params, spk_id, aug_shift)
    assert out1.shape == (B, T1, H), out1.shape
    assert out1.dtype == jnp.float32, out1.dtype
    assert jnp.allclose(out1, ref1, atol=2e-5, rtol=2e-5), (
        float(jnp.max(jnp.abs(out1 - ref1))))

    # ---- run 2: multi-tile + ragged tail (T=300, tile=128), default perf ----
    #      config (bf16 MXU operands, bf16 output)
    T2 = 300
    units2 = jax.random.normal(ku2, (B, T2, C), jnp.float32)
    f02 = 100.0 + 400.0 * jax.random.uniform(kf2, (B, T2, 1), jnp.float32)
    vol2 = jax.random.uniform(kv2, (B, T2, 1), jnp.float32)

    out2 = unit2melv2_cond(units2, f02, vol2, params, spk_id=spk_id,
                           aug_shift=aug_shift, t_tile=128)
    out2 = jax.block_until_ready(out2)
    assert out2.shape == (B, T2, H), out2.shape
    assert out2.dtype == jnp.bfloat16, out2.dtype

    out2_f32 = out2.astype(jnp.float32)
    ref2_bf16 = ref_forward(units2, f02, vol2, params, spk_id, aug_shift,
                            mxu_dtype=jnp.bfloat16)
    ref2_f32 = ref_forward(units2, f02, vol2, params, spk_id, aug_shift)
    err_bf16 = float(jnp.max(jnp.abs(out2_f32 - ref2_bf16)))
    err_f32 = float(jnp.max(jnp.abs(out2_f32 - ref2_f32)))
    assert err_bf16 < 2e-2, err_bf16    # matches bf16-emulated ref up to out-cast ulp
    assert err_f32 < 6e-2, err_f32      # close to full-f32 ref

    print("KERNEL_OK")
</pallas_src>

<mosaic_0001>
module attributes {stable_mosaic.version = 11 : i64} {
  func.func @_cond_kernel(%arg0: i32, %arg1: i32, %arg2: memref<1x56x8xf32, #tpu.memory_space<vmem>>, %arg3: memref<1x56x2xf32, #tpu.memory_space<vmem>>, %arg4: memref<8x32xf32, #tpu.memory_space<vmem>>, %arg5: memref<2x32xf32, #tpu.memory_space<vmem>>, %arg6: memref<1x1x32xf32, #tpu.memory_space<vmem>>, %arg7: memref<1x56x32xf32, #tpu.memory_space<vmem>>) attributes {dimension_semantics = [#tpu.dimension_semantics<parallel>, #tpu.dimension_semantics<parallel>], iteration_bounds = array<i64: 2, 1>, scalar_prefetch = 0 : i64, scratch_operands = 0 : i64, tpu.core_type = #tpu.core_type<tc>, window_params = [{transform_indices = @transform_0, window_bounds = array<i64: 1, 56, 8>}, {transform_indices = @transform_1, window_bounds = array<i64: 1, 56, 2>}, {pipeline_mode = #tpu.pipeline_mode<synchronous>, transform_indices = @transform_2, window_bounds = array<i64: 8, 32>}, {pipeline_mode = #tpu.pipeline_mode<synchronous>, transform_indices = @transform_3, window_bounds = array<i64: 2, 32>}, {transform_indices = @transform_4, window_bounds = array<i64: 1, 1, 32>}, {transform_indices = @transform_5, window_bounds = array<i64: 1, 56, 32>}]} {
    %c0 = arith.constant 0 : index
    %c0_0 = arith.constant 0 : index
    %c0_1 = arith.constant 0 : index
    %0 = vector.load %arg2[%c0, %c0_0, %c0_1] : memref<1x56x8xf32, #tpu.memory_space<vmem>>, vector<1x56x8xf32>
    %1 = vector.shape_cast %0 : vector<1x56x8xf32> to vector<56x8xf32>
    %c0_2 = arith.constant 0 : index
    %c0_3 = arith.constant 0 : index
    %2 = vector.load %arg4[%c0_2, %c0_3] : memref<8x32xf32, #tpu.memory_space<vmem>>, vector<8x32xf32>
    %cst = arith.constant dense<0.000000e+00> : vector<56x32xf32>
    %3 = tpu.matmul %1, %2, %cst {dimension_numbers = #tpu.dot_dimension_numbers<[1], [0], [0], [1], [0, 0, 1, 1], [], []>} : vector<56x8xf32>, vector<8x32xf32>, vector<56x32xf32> -> vector<56x32xf32>
    %c0_4 = arith.constant 0 : index
    %c0_5 = arith.constant 0 : index
    %c0_6 = arith.constant 0 : index
    %4 = vector.load %arg3[%c0_4, %c0_5, %c0_6] : memref<1x56x2xf32, #tpu.memory_space<vmem>>, vector<1x56x2xf32>
    %5 = vector.shape_cast %4 : vector<1x56x2xf32> to vector<56x2xf32>
    %6 = vector.extract_strided_slice %5 {offsets = [0, 0], sizes = [56, 1], strides = [1, 1]} : vector<56x2xf32> to vector<56x1xf32>
    %c0_7 = arith.constant 0 : index
    %c0_8 = arith.constant 0 : index
    %7 = vector.load %arg5[%c0_7, %c0_8] : memref<2x32xf32, #tpu.memory_space<vmem>>, vector<1x32xf32>
    %8 = vector.broadcast %6 : vector<56x1xf32> to vector<56x32xf32>
    %9 = vector.broadcast %7 : vector<1x32xf32> to vector<56x32xf32>
    %10 = arith.mulf %8, %9 : vector<56x32xf32>
    %11 = arith.addf %3, %10 : vector<56x32xf32>
    %12 = vector.extract_strided_slice %5 {offsets = [0, 1], sizes = [56, 1], strides = [1, 1]} : vector<56x2xf32> to vector<56x1xf32>
    %c1 = arith.constant 1 : index
    %c0_9 = arith.constant 0 : index
    %13 = vector.load %arg5[%c1, %c0_9] : memref<2x32xf32, #tpu.memory_space<vmem>>, vector<1x32xf32>
    %14 = vector.broadcast %12 : vector<56x1xf32> to vector<56x32xf32>
    %15 = vector.broadcast %13 : vector<1x32xf32> to vector<56x32xf32>
    %16 = arith.mulf %14, %15 : vector<56x32xf32>
    %17 = arith.addf %11, %16 : vector<56x32xf32>
    %c0_10 = arith.constant 0 : index
    %c0_11 = arith.constant 0 : index
    %c0_12 = arith.constant 0 : index
    %18 = vector.load %arg6[%c0_10, %c0_11, %c0_12] : memref<1x1x32xf32, #tpu.memory_space<vmem>>, vector<1x1x32xf32>
    %19 = vector.shape_cast %18 : vector<1x1x32xf32> to vector<1x32xf32>
    %20 = vector.broadcast %19 : vector<1x32xf32> to vector<56x32xf32>
    %21 = arith.addf %17, %20 : vector<56x32xf32>
    %c0_13 = arith.constant 0 : index
    %c0_14 = arith.constant 0 : index
    %c0_15 = arith.constant 0 : index
    %22 = vector.load %arg7[%c0_13, %c0_14, %c0_15] : memref<1x56x32xf32, #tpu.memory_space<vmem>>, vector<1x56x32xf32>
    %23 = vector.shape_cast %22 : vector<1x56x32xf32> to vector<56x32xf32>
    %24 = vector.shape_cast %21 : vector<56x32xf32> to vector<1x56x32xf32>
    tpu.vector_store %arg7[%c0_13, %c0_14, %c0_15], %24 {strides = array<i32>} : memref<1x56x32xf32, #tpu.memory_space<vmem>>, vector<1x56x32xf32>,
    return
  }
  func.func @transform_0(%arg0: i32, %arg1: i32) -> (i32, i32, i32) {
    %c0_i32 = arith.constant 0 : i32
    %c0_i32_0 = arith.constant 0 : i32
    return %arg0, %arg1, %c0_i32 : i32, i32, i32
  }
  func.func @transform_1(%arg0: i32, %arg1: i32) -> (i32, i32, i32) {
    %c0_i32 = arith.constant 0 : i32
    %c0_i32_0 = arith.constant 0 : i32
    return %arg0, %arg1, %c0_i32 : i32, i32, i32
  }
  func.func @transform_2(%arg0: i32, %arg1: i32) -> (i32, i32) {
    %c0_i32 = arith.constant 0 : i32
    %c0_i32_0 = arith.constant 0 : i32
    %c0_i32_1 = arith.constant 0 : i32
    return %c0_i32, %c0_i32_0 : i32, i32
  }
  func.func @transform_3(%arg0: i32, %arg1: i32) -> (i32, i32) {
    %c0_i32 = arith.constant 0 : i32
    %c0_i32_0 = arith.constant 0 : i32
    %c0_i32_1 = arith.constant 0 : i32
    return %c0_i32, %c0_i32_0 : i32, i32
  }
  func.func @transform_4(%arg0: i32, %arg1: i32) -> (i32, i32, i32) {
    %c0_i32 = arith.constant 0 : i32
    %c0_i32_0 = arith.constant 0 : i32
    %c0_i32_1 = arith.constant 0 : i32
    return %arg0, %c0_i32, %c0_i32_0 : i32, i32, i32
  }
  func.func @transform_5(%arg0: i32, %arg1: i32) -> (i32, i32, i32) {
    %c0_i32 = arith.constant 0 : i32
    %c0_i32_0 = arith.constant 0 : i32
    return %arg0, %arg1, %c0_i32 : i32, i32, i32
  }
}

module attributes {stable_mosaic.version = 11 : i64} {
  func.func @_cond_kernel(%arg0: i32, %arg1: i32, %arg2: memref<1x56x8xf32, #tpu.memory_space<vmem>>, %arg3: memref<1x56x2xf32, #tpu.memory_space<vmem>>, %arg4: memref<8x32xf32, #tpu.memory_space<vmem>>, %arg5: memref<2x32xf32, #tpu.memory_space<vmem>>, %arg6: memref<1x1x32xf32, #tpu.memory_space<vmem>>, %arg7: memref<1x56x32xf32, #tpu.memory_space<vmem>>) attributes {dimension_semantics = [#tpu.dimension_semantics<parallel>, #tpu.dimension_semantics<parallel>], iteration_bounds = array<i64: 2, 1>, scalar_prefetch = 0 : i64, scratch_operands = 0 : i64, tpu.core_type = #tpu.core_type<tc>, window_params = [{transform_indices = @transform_0, window_bounds = array<i64: 1, 56, 8>}, {transform_indices = @transform_1, window_bounds = array<i64: 1, 56, 2>}, {pipeline_mode = #tpu.pipeline_mode<synchronous>, transform_indices = @transform_2, window_bounds = array<i64: 8, 32>}, {pipeline_mode = #tpu.pipeline_mode<synchronous>, transform_indices = @transform_3, window_bounds = array<i64: 2, 32>}, {transform_indices = @transform_4, window_bounds = array<i64: 1, 1, 32>}, {transform_indices = @transform_5, window_bounds = array<i64: 1, 56, 32>}]} {
    %c0 = arith.constant 0 : index
    %c0_0 = arith.constant 0 : index
    %c0_1 = arith.constant 0 : index
    %0 = vector.load %arg2[%c0, %c0_0, %c0_1] : memref<1x56x8xf32, #tpu.memory_space<vmem>>, vector<1x56x8xf32>
    %1 = vector.shape_cast %0 : vector<1x56x8xf32> to vector<56x8xf32>
    %c0_2 = arith.constant 0 : index
    %c0_3 = arith.constant 0 : index
    %2 = vector.load %arg4[%c0_2, %c0_3] : memref<8x32xf32, #tpu.memory_space<vmem>>, vector<8x32xf32>
    %cst = arith.constant dense<0.000000e+00> : vector<56x32xf32>
    %3 = tpu.matmul %1, %2, %cst {dimension_numbers = #tpu.dot_dimension_numbers<[1], [0], [0], [1], [0, 0, 1, 1], [], []>} : vector<56x8xf32>, vector<8x32xf32>, vector<56x32xf32> -> vector<56x32xf32>
    %c0_4 = arith.constant 0 : index
    %c0_5 = arith.constant 0 : index
    %c0_6 = arith.constant 0 : index
    %4 = vector.load %arg3[%c0_4, %c0_5, %c0_6] : memref<1x56x2xf32, #tpu.memory_space<vmem>>, vector<1x56x2xf32>
    %5 = vector.shape_cast %4 : vector<1x56x2xf32> to vector<56x2xf32>
    %6 = vector.extract_strided_slice %5 {offsets = [0, 0], sizes = [56, 1], strides = [1, 1]} : vector<56x2xf32> to vector<56x1xf32>
    %c0_7 = arith.constant 0 : index
    %c0_8 = arith.constant 0 : index
    %7 = vector.load %arg5[%c0_7, %c0_8] : memref<2x32xf32, #tpu.memory_space<vmem>>, vector<1x32xf32>
    %8 = vector.broadcast %6 : vector<56x1xf32> to vector<56x32xf32>
    %9 = vector.broadcast %7 : vector<1x32xf32> to vector<56x32xf32>
    %10 = arith.mulf %8, %9 : vector<56x32xf32>
    %11 = arith.addf %3, %10 : vector<56x32xf32>
    %12 = vector.extract_strided_slice %5 {offsets = [0, 1], sizes = [56, 1], strides = [1, 1]} : vector<56x2xf32> to vector<56x1xf32>
    %c1 = arith.constant 1 : index
    %c0_9 = arith.constant 0 : index
    %13 = vector.load %arg5[%c1, %c0_9] : memref<2x32xf32, #tpu.memory_space<vmem>>, vector<1x32xf32>
    %14 = vector.broadcast %12 : vector<56x1xf32> to vector<56x32xf32>
    %15 = vector.broadcast %13 : vector<1x32xf32> to vector<56x32xf32>
    %16 = arith.mulf %14, %15 : vector<56x32xf32>
    %17 = arith.addf %11, %16 : vector<56x32xf32>
    %c0_10 = arith.constant 0 : index
    %c0_11 = arith.constant 0 : index
    %c0_12 = arith.constant 0 : index
    %18 = vector.load %arg6[%c0_10, %c0_11, %c0_12] : memref<1x1x32xf32, #tpu.memory_space<vmem>>, vector<1x1x32xf32>
    %19 = vector.shape_cast %18 : vector<1x1x32xf32> to vector<1x32xf32>
    %20 = vector.broadcast %19 : vector<1x32xf32> to vector<56x32xf32>
    %21 = arith.addf %17, %20 : vector<56x32xf32>
    %c0_13 = arith.constant 0 : index
    %c0_14 = arith.constant 0 : index
    %c0_15 = arith.constant 0 : index
    %22 = vector.load %arg7[%c0_13, %c0_14, %c0_15] : memref<1x56x32xf32, #tpu.memory_space<vmem>>, vector<1x56x32xf32>
    %23 = vector.shape_cast %22 : vector<1x56x32xf32> to vector<56x32xf32>
    %24 = vector.shape_cast %21 : vector<56x32xf32> to vector<1x56x32xf32>
    tpu.vector_store %arg7[%c0_13, %c0_14, %c0_15], %24 {strides = array<i32>} : memref<1x56x32xf32, #tpu.memory_space<vmem>>, vector<1x56x32xf32>,
    return
  }
  func.func @transform_0(%arg0: i32, %arg1: i32) -> (i32, i32, i32) {
    %c0_i32 = arith.constant 0 : i32
    %c0_i32_0 = arith.constant 0 : i32
    return %arg0, %arg1, %c0_i32 : i32, i32, i32
  }
  func.func @transform_1(%arg0: i32, %arg1: i32) -> (i32, i32, i32) {
    %c0_i32 = arith.constant 0 : i32
    %c0_i32_0 = arith.constant 0 : i32
    return %arg0, %arg1, %c0_i32 : i32, i32, i32
  }
  func.func @transform_2(%arg0: i32, %arg1: i32) -> (i32, i32) {
    %c0_i32 = arith.constant 0 : i32
    %c0_i32_0 = arith.constant 0 : i32
    %c0_i32_1 = arith.constant 0 : i32
    return %c0_i32, %c0_i32_0 : i32, i32
  }
  func.func @transform_3(%arg0: i32, %arg1: i32) -> (i32, i32) {
    %c0_i32 = arith.constant 0 : i32
    %c0_i32_0 = arith.constant 0 : i32
    %c0_i32_1 = arith.constant 0 : i32
    return %c0_i32, %c0_i32_0 : i32, i32
  }
  func.func @transform_4(%arg0: i32, %arg1: i32) -> (i32, i32, i32) {
    %c0_i32 = arith.constant 0 : i32
    %c0_i32_0 = arith.constant 0 : i32
    %c0_i32_1 = arith.constant 0 : i32
    return %arg0, %c0_i32, %c0_i32_0 : i32, i32, i32
  }
  func.func @transform_5(%arg0: i32, %arg1: i32) -> (i32, i32, i32) {
    %c0_i32 = arith.constant 0 : i32
    %c0_i32_0 = arith.constant 0 : i32
    return %arg0, %arg1, %c0_i32 : i32, i32, i32
  }
}

</mosaic_0001>

<bundles_post_ra>
// kernel: tpu_custom_call.1
= control target key start
LH: loop header
LB: loop body
LE: loop exit
PB: predicated region body
PF: predicated region fallthrough
CT: control target
= control target key end

     0   :  { %s825_s18 = smov 0   ;;  %s827_s19 = smov 0   ;;  %s921_s0 = inlined_call_operand.vmem [shape: f32[2,50,8], index: 0, kind: input, shape index: {}]   ;;  %s922_s1 = inlined_call_operand.vmem [shape: f32[2,50,2], index: 1, kind: input, shape index: {}]   ;;  %s923_s2 = inlined_call_operand.vmem [shape: f32[8,32], index: 2, kind: input, shape index: {}]   ;;  %s924_s3 = inlined_call_operand.vmem [shape: f32[2,32], index: 3, kind: input, shape index: {}]   ;;  %s925_s4 = inlined_call_operand.vmem [shape: f32[2,1,32], index: 4, kind: input, shape index: {}]   ;;  %s926_s5 = inlined_call_operand.vmem [shape: f32[2,50,32], index: 5, kind: output, shape index: {}]  }
   0x1   :  { %s829_s20 = smov 0  }
   0x2 LB: > { %s27_s21 = sadd.s32 1, %s785_s19  ;;  %p685_p0 = scmp.ge.s32.totalorder %s789_s20, 1  ;;  %s789_s20 = sphi %s829_s20, %s15_s20   ;;  %s785_s19 = sphi %s827_s19, %s928_s19   ;;  %s781_s18 = sphi %s825_s18, %s927_s18  }
   0x3   : > { %p29_p1 = scmp.ge.s32.totalorder %s27_s21, 2  ;;  %p233_p2 = scmp.lt.s32.totalorder %s789_s20, 3 }
   0x5   : > { %s930_s21 = smov (%p29_p1, %s27_s21), 0  ;;  %p234_p3 = pnand %p685_p0, %p233_p2 }
   0x6   : > { %p282_p4 = scmp.lt.s32.totalorder (!%p234_p3), %s781_s18, 1 }
   0x7   : > { %237 = sbr.rel (%p234_p3) target bundleno = 229 (0xe5), region = 40 }
   0xc   : > { %v321_v0 = vld [vmem:[%s923_s2] sm:$0xff]  ;;  %v791_v1 = vmov 0.0   ;;  %s932_s18 = smov (!%p282_p4, %s781_s18), 1  ;;  %vm792_vm0 = vmmov 0   ;;  %v793_v2 = vmov 0   ;;  %vm376_vm1 = vcmask 64512  }
   0xd   : > { %709 = vmatprep.subr.mxu0 %v791_v1  ;;  %732 = vmatprep.subr.mxu1 %v791_v1  ;;  %s851_s24 = smul.u32 56, %s932_s18  ;;  %v794_v17 = vmov 1   ;;  %v689_v29 = vld [vmem:[%s924_s3] ss:$0 sm:$0xff]  ;;  %v697_v30 = vld [vmem:[%s924_s3 + $0x1] ss:$0 sm:$0xff]  ;;  %s303_s12 = scalar_lea.vmem %s925_s4, %s932_s18 }
   0xe   : > { %710 = vmatpush3.msra.mxu0 %v321_v0  ;;  %733 = vmatpush3.msra.mxu1 %v321_v0  ;;  %v698_v42 = vld [vmem:[%s303_s12] ss:$0 sm:$0xff]  ;;  %vm559_vm2 = vcmask 261120  }
   0xf   : > { %711 = vmatprep.mubr.msk.f32.mxu0 %vm792_vm0, %v791_v1  ;;  %723 = vmatprep.mubr.msk.f32.mxu1 %vm792_vm0, %v791_v1  ;;  %s289_s27 = scalar_lea.vmem %s921_s0, %s851_s24  ;;  %s861_s30 = scalar_lea.vmem %s922_s1, %s851_s24 }
  0x10   : > { %764 = vset.pattern.permute.xlu1 %v793_v2  ;;  %763 = vset.pattern.permute.xlu0 %v793_v2  ;;  %v314_v3 = vld [vmem:[%s289_s27] sm:$0xff]  ;;  %v315_v5 = vld [vmem:[%s289_s27 + $0x8] sm:$0xff]  ;;  %v324_v7 = vld [vmem:[%s861_s30 + $0x10] sm:$0xff]  ;;  %s896_s15 = scalar_lea.vmem %s926_s5, %s851_s24 }
  0x11   : > { %v318_v4 = vld [vmem:[%s289_s27 + $0x20] sm:$0xff]  ;;  %712 = vmatmul.mubr.msk.f32.vlgmr.msra.gmra.mxu0 %vm376_vm1, %v314_v3  ;;  %v319_v6 = vld [vmem:[%s289_s27 + $0x28] sm:$0xff]  ;;  %342 = vperm.xlu1 %764, %v324_v7   ;;  %v325_v9 = vld [vmem:[%s861_s30 + $0x18] sm:$0xff] }
  0x12   : > { %724 = vmatmul.mubr.msk.f32.vlgmr.msra.gmra.mxu1 %vm376_vm1, %v318_v4  ;;  %714 = vmatprep.mubr.msk.f32.mxu0 %vm792_vm0, %v791_v1  ;;  %v322_v8 = vld [vmem:[%s861_s30] sm:$0xff]  ;;  %v323_v10 = vld [vmem:[%s861_s30 + $0x8] sm:$0xff]  ;;  %v316_v11 = vld [vmem:[%s289_s27 + $0x10] sm:$0xff] }
  0x13   : > { %726 = vmatprep.mubr.msk.f32.mxu1 %vm792_vm0, %v791_v1  ;;  %332 = vperm.xlu0 %763, %v322_v8   ;;  %v320_v12 = vld [vmem:[%s289_s27 + $0x30] sm:$0xff]  ;;  %v327_v13 = vld [vmem:[%s861_s30 + $0x28] sm:$0xff]  ;;  %v326_v14 = vld [vmem:[%s861_s30 + $0x20] sm:$0xff] }
  0x14   : > { %v317_v15 = vld [vmem:[%s289_s27 + $0x18] sm:$0xff]  ;;  %v328_v16 = vld [vmem:[%s861_s30 + $0x30] sm:$0xff] }
  0x15   : > { %715 = vmatmul.mubr.msk.f32.gmra.mxu0 %vm376_vm1, %v315_v5  ;;  %347 = vperm.xlu1 %764, %v325_v9  }
  0x16   : > { %727 = vmatmul.mubr.msk.f32.gmra.mxu1 %vm376_vm1, %v319_v6  ;;  %717 = vmatprep.mubr.msk.f32.mxu0 %vm792_vm0, %v791_v1 }
  0x17   : > { %729 = vmatprep.mubr.msk.f32.mxu1 %vm792_vm0, %v791_v1  ;;  %337 = vperm.xlu0 %763, %v323_v10  }
  0x19   : > { %718 = vmatmul.mubr.msk.f32.gmra.mxu0 %vm376_vm1, %v316_v11  ;;  %357 = vperm.xlu1 %764, %v327_v13  }
  0x1a   : > { %730 = vmatmul.mubr.msk.f32.gmra.mxu1 %vm376_vm1, %v320_v12  ;;  %720 = vmatprep.mubr.msk.f32.mxu0 %vm792_vm0, %v791_v1 }
  0x1b   : > { %352 = vperm.xlu0 %763, %v326_v14  }
  0x1d   : > { %721 = vmatmul.mubr.msk.f32.gmra.mxu0 %vm376_vm1, %v317_v15  ;;  %765 = vset.pattern.permute.xlu1 %v794_v17 }
  0x1e   : > { %500 = vperm.xlu1 %765, %v322_v8  }
  0x1f   : > { %362 = vperm.xlu0 %763, %v328_v16  }
  0x22   : > { %508 = vperm.xlu1 %765, %v324_v7  }
  0x23   : > { %766 = vset.pattern.permute.xlu0 %v794_v17 }
  0x24   : > { %504 = vperm.xlu0 %766, %v323_v10  }
  0x26   : > { %512 = vperm.xlu1 %765, %v325_v9  }
  0x28   : > { %516 = vperm.xlu0 %766, %v326_v14  }
  0x2a   : > { %520 = vperm.xlu1 %765, %v327_v13  }
  0x2c   : > { %524 = vperm.xlu0 %766, %v328_v16  }
  0x8c   : > { %v343_v18 = vpop.permute.xlu1 %342 }
  0x8d   : > { %v371_v59 = vmul.f32 %v689_v29, %v343_v18 }
  0x8e   : > { %v333_v19 = vpop.permute.xlu0 %332 }
  0x8f   : > { %v369_v32 = vmul.f32 %v689_v29, %v333_v19 }
  0x90   : > { %v348_v20 = vpop.permute.xlu1 %347 }
  0x91   : > { %v372_v9 = vmul.f32 %v689_v29, %v348_v20 }
  0x92   : > { %v338_v21 = vpop.permute.xlu0 %337 }
  0x93   : > { %v370_v41 = vmul.f32 %v689_v29, %v338_v21 }
  0x94   : > { %v358_v22 = vpop.permute.xlu1 %357 }
  0x95   : > { %v374_v45 = vmul.f32 %v689_v29, %v358_v22 }
  0x96   : > { %v353_v23 = vpop.permute.xlu0 %352 }
  0x97   : > { %v373_v33 = vmul.f32 %v689_v29, %v353_v23 }
  0x99   : > { %v501_v24 = vpop.permute.xlu1 %500 }
  0x9a   : > { %v363_v25 = vpop.permute.xlu0 %362  ;;  %v531_v34 = vmul.f32 %v697_v30, %v501_v24 }
  0x9b   : > { %v375_v60 = vmul.f32 %v689_v29, %v363_v25 }
  0x9d   : > { %v509_v26 = vpop.permute.xlu1 %508 }
  0x9e   : > { %v533_v63 = vmul.f32 %v697_v30, %v509_v26 }
  0x9f   : > { %v505_v27 = vpop.permute.xlu0 %504 }
  0xa0   : > { %v532_v46 = vmul.f32 %v697_v30, %v505_v27 }
  0xa1   : > { %v513_v28 = vpop.permute.xlu1 %512 }
  0xa2   : > { %v534_v13 = vmul.f32 %v697_v30, %v513_v28 }
  0xa3   : > { %v517_v31 = vpop.permute.xlu0 %516 }
  0xa4   : > { %v535_v35 = vmul.f32 %v697_v30, %v517_v31 }
  0xa5   : > { %v521_v38 = vpop.permute.xlu1 %520 }
  0xa6   : > { %v536_v49 = vmul.f32 %v697_v30, %v521_v38 }
  0xa7   : > { %v525_v54 = vpop.permute.xlu0 %524 }
  0xa8   : > { %v537_v0 = vmul.f32 %v697_v30, %v525_v54 }
  0xd1   : > { %v464_v36 = vpop.f32.mrf.mxu0 }
  0xd2   : > { %v484_v37 = vpop.f32.mrf.mxu1  ;;  %v465_v39 = vadd.f32 %v464_v36, %v369_v32 }
  0xd3   : > { %v485_v40 = vadd.f32 %v484_v37, %v373_v33  ;;  %v713_v43 = vpop.f32.mrf.mxu0 }
  0xd4   : > { %v725_v44 = vpop.f32.mrf.mxu1  ;;  %v538_v47 = vadd.f32 %v531_v34, %v465_v39 }
  0xd5   : > { %v542_v48 = vadd.f32 %v535_v35, %v485_v40  ;;  %v469_v50 = vpop.f32.mrf.mxu0 }
  0xd6   : > { %v489_v51 = vpop.f32.mrf.mxu1  ;;  %v552_v52 = vadd.f32 %v698_v42, %v538_v47  ;;  %v470_v55 = vadd.f32 %v469_v50, %v370_v41 }
  0xd7   : > { %v556_v53 = vadd.f32 %v698_v42, %v542_v48  ;;  %v490_v56 = vadd.f32 %v489_v51, %v374_v45  ;;  %v716_v57 = vpop.f32.mrf.mxu0 }
  0xd8   : > { %v728_v58 = vpop.f32.mrf.mxu1  ;;  %560 = vst.msk [vmem:[%s896_s15] sm:$0xff] %vm559_vm2, %v552_v52  ;;  %v539_v61 = vadd.f32 %v532_v46, %v470_v55 }
  0xd9   : > { %564 = vst.msk [vmem:[%s896_s15 + $0x20] sm:$0xff] %vm559_vm2, %v556_v53  ;;  %v543_v62 = vadd.f32 %v536_v49, %v490_v56  ;;  %v474_v1 = vpop.f32.mrf.mxu0 }
  0xda   : > { %v494_v2 = vpop.f32.mrf.mxu1  ;;  %v553_v3 = vadd.f32 %v698_v42, %v539_v61  ;;  %v475_v5 = vadd.f32 %v474_v1, %v371_v59 }
  0xdb   : > { %v557_v4 = vadd.f32 %v698_v42, %v543_v62  ;;  %v495_v6 = vadd.f32 %v494_v2, %v375_v60  ;;  %v719_v7 = vpop.f32.mrf.mxu0 }
  0xdc   : > { %v731_v8 = vpop.f32.mrf.mxu1  ;;  %561 = vst.msk [vmem:[%s896_s15 + $0x8] sm:$0xff] %vm559_vm2, %v553_v3  ;;  %v540_v10 = vadd.f32 %v533_v63, %v475_v5 }
  0xdd   : > { %565 = vst.msk [vmem:[%s896_s15 + $0x28] sm:$0xff] %vm559_vm2, %v557_v4  ;;  %v544_v11 = vadd.f32 %v537_v0, %v495_v6  ;;  %v479_v12 = vpop.f32.mrf.mxu0 }
  0xde   : > { %v554_v14 = vadd.f32 %v698_v42, %v540_v10  ;;  %v480_v16 = vadd.f32 %v479_v12, %v372_v9 }
  0xdf   : > { %v558_v15 = vadd.f32 %v698_v42, %v544_v11  ;;  %v722_v17 = vpop.f32.mrf.mxu0 }
  0xe0   : > { %562 = vst.msk [vmem:[%s896_s15 + $0x10] sm:$0xff] %vm559_vm2, %v554_v14  ;;  %v541_v18 = vadd.f32 %v534_v13, %v480_v16 }
  0xe1   : > { %566 = vst.msk [vmem:[%s896_s15 + $0x30] sm:$0xff] %vm559_vm2, %v558_v15 }
  0xe2   : > { %v555_v19 = vadd.f32 %v698_v42, %v541_v18 }
  0xe4   : > { %563 = vst.msk [vmem:[%s896_s15 + $0x18] sm:$0xff] %vm559_vm2, %v555_v19 }
  0xe5 PF: > { %s15_s20 = sadd.s32 1, %s789_s20   ;;  %s927_s18 = smov %s785_s19 }
  0xe6   : > { %p12_p5 = scmp.ge.s32.totalorder %s15_s20, 4   ;;  %s928_s19 = smov %s930_s21 }
  0xe8   :  { %14 = sbr.rel (!%p12_p5) target bundleno = 2 (0x2), region = 76 }

// kernel: tpu_custom_call.1
= control target key start
LH: loop header
LB: loop body
LE: loop exit
PB: predicated region body
PF: predicated region fallthrough
CT: control target
= control target key end

     0   :  { %s825_s18 = smov 0   ;;  %s827_s19 = smov 0   ;;  %s921_s0 = inlined_call_operand.vmem [shape: f32[2,50,8], index: 0, kind: input, shape index: {}]   ;;  %s922_s1 = inlined_call_operand.vmem [shape: f32[2,50,2], index: 1, kind: input, shape index: {}]   ;;  %s923_s2 = inlined_call_operand.vmem [shape: f32[8,32], index: 2, kind: input, shape index: {}]   ;;  %s924_s3 = inlined_call_operand.vmem [shape: f32[2,32], index: 3, kind: input, shape index: {}]   ;;  %s925_s4 = inlined_call_operand.vmem [shape: f32[2,1,32], index: 4, kind: input, shape index: {}]   ;;  %s926_s5 = inlined_call_operand.vmem [shape: f32[2,50,32], index: 5, kind: output, shape index: {}]  }
   0x1   :  { %s829_s20 = smov 0  }
   0x2 LB: > { %s27_s21 = sadd.s32 1, %s785_s19  ;;  %p685_p0 = scmp.ge.s32.totalorder %s789_s20, 1  ;;  %s789_s20 = sphi %s829_s20, %s15_s20   ;;  %s785_s19 = sphi %s827_s19, %s928_s19   ;;  %s781_s18 = sphi %s825_s18, %s927_s18  }
   0x3   : > { %p29_p1 = scmp.ge.s32.totalorder %s27_s21, 2  ;;  %p233_p2 = scmp.lt.s32.totalorder %s789_s20, 3 }
   0x5   : > { %s930_s21 = smov (%p29_p1, %s27_s21), 0  ;;  %p234_p3 = pnand %p685_p0, %p233_p2 }
   0x6   : > { %p282_p4 = scmp.lt.s32.totalorder (!%p234_p3), %s781_s18, 1 }
   0x7   : > { %237 = sbr.rel (%p234_p3) target bundleno = 229 (0xe5), region = 40 }
   0xc   : > { %v321_v0 = vld [vmem:[%s923_s2] sm:$0xff]  ;;  %v791_v1 = vmov 0.0   ;;  %s932_s18 = smov (!%p282_p4, %s781_s18), 1  ;;  %vm792_vm0 = vmmov 0   ;;  %v793_v2 = vmov 0   ;;  %vm376_vm1 = vcmask 64512  }
   0xd   : > { %709 = vmatprep.subr.mxu0 %v791_v1  ;;  %732 = vmatprep.subr.mxu1 %v791_v1  ;;  %s851_s24 = smul.u32 56, %s932_s18  ;;  %v794_v17 = vmov 1   ;;  %v689_v29 = vld [vmem:[%s924_s3] ss:$0 sm:$0xff]  ;;  %v697_v30 = vld [vmem:[%s924_s3 + $0x1] ss:$0 sm:$0xff]  ;;  %s303_s12 = scalar_lea.vmem %s925_s4, %s932_s18 }
   0xe   : > { %710 = vmatpush3.msra.mxu0 %v321_v0  ;;  %733 = vmatpush3.msra.mxu1 %v321_v0  ;;  %v698_v42 = vld [vmem:[%s303_s12] ss:$0 sm:$0xff]  ;;  %vm559_vm2 = vcmask 261120  }
   0xf   : > { %711 = vmatprep.mubr.msk.f32.mxu0 %vm792_vm0, %v791_v1  ;;  %723 = vmatprep.mubr.msk.f32.mxu1 %vm792_vm0, %v791_v1  ;;  %s289_s27 = scalar_lea.vmem %s921_s0, %s851_s24  ;;  %s861_s30 = scalar_lea.vmem %s922_s1, %s851_s24 }
  0x10   : > { %764 = vset.pattern.permute.xlu1 %v793_v2  ;;  %763 = vset.pattern.permute.xlu0 %v793_v2  ;;  %v314_v3 = vld [vmem:[%s289_s27] sm:$0xff]  ;;  %v315_v5 = vld [vmem:[%s289_s27 + $0x8] sm:$0xff]  ;;  %v324_v7 = vld [vmem:[%s861_s30 + $0x10] sm:$0xff]  ;;  %s896_s15 = scalar_lea.vmem %s926_s5, %s851_s24 }
  0x11   : > { %v318_v4 = vld [vmem:[%s289_s27 + $0x20] sm:$0xff]  ;;  %712 = vmatmul.mubr.msk.f32.vlgmr.msra.gmra.mxu0 %vm376_vm1, %v314_v3  ;;  %v319_v6 = vld [vmem:[%s289_s27 + $0x28] sm:$0xff]  ;;  %342 = vperm.xlu1 %764, %v324_v7   ;;  %v325_v9 = vld [vmem:[%s861_s30 + $0x18] sm:$0xff] }
  0x12   : > { %724 = vmatmul.mubr.msk.f32.vlgmr.msra.gmra.mxu1 %vm376_vm1, %v318_v4  ;;  %714 = vmatprep.mubr.msk.f32.mxu0 %vm792_vm0, %v791_v1  ;;  %v322_v8 = vld [vmem:[%s861_s30] sm:$0xff]  ;;  %v323_v10 = vld [vmem:[%s861_s30 + $0x8] sm:$0xff]  ;;  %v316_v11 = vld [vmem:[%s289_s27 + $0x10] sm:$0xff] }
  0x13   : > { %726 = vmatprep.mubr.msk.f32.mxu1 %vm792_vm0, %v791_v1  ;;  %332 = vperm.xlu0 %763, %v322_v8   ;;  %v320_v12 = vld [vmem:[%s289_s27 + $0x30] sm:$0xff]  ;;  %v327_v13 = vld [vmem:[%s861_s30 + $0x28] sm:$0xff]  ;;  %v326_v14 = vld [vmem:[%s861_s30 + $0x20] sm:$0xff] }
  0x14   : > { %v317_v15 = vld [vmem:[%s289_s27 + $0x18] sm:$0xff]  ;;  %v328_v16 = vld [vmem:[%s861_s30 + $0x30] sm:$0xff] }
  0x15   : > { %715 = vmatmul.mubr.msk.f32.gmra.mxu0 %vm376_vm1, %v315_v5  ;;  %347 = vperm.xlu1 %764, %v325_v9  }
  0x16   : > { %727 = vmatmul.mubr.msk.f32.gmra.mxu1 %vm376_vm1, %v319_v6  ;;  %717 = vmatprep.mubr.msk.f32.mxu0 %vm792_vm0, %v791_v1 }
  0x17   : > { %729 = vmatprep.mubr.msk.f32.mxu1 %vm792_vm0, %v791_v1  ;;  %337 = vperm.xlu0 %763, %v323_v10  }
  0x19   : > { %718 = vmatmul.mubr.msk.f32.gmra.mxu0 %vm376_vm1, %v316_v11  ;;  %357 = vperm.xlu1 %764, %v327_v13  }
  0x1a   : > { %730 = vmatmul.mubr.msk.f32.gmra.mxu1 %vm376_vm1, %v320_v12  ;;  %720 = vmatprep.mubr.msk.f32.mxu0 %vm792_vm0, %v791_v1 }
  0x1b   : > { %352 = vperm.xlu0 %763, %v326_v14  }
  0x1d   : > { %721 = vmatmul.mubr.msk.f32.gmra.mxu0 %vm376_vm1, %v317_v15  ;;  %765 = vset.pattern.permute.xlu1 %v794_v17 }
  0x1e   : > { %500 = vperm.xlu1 %765, %v322_v8  }
  0x1f   : > { %362 = vperm.xlu0 %763, %v328_v16  }
  0x22   : > { %508 = vperm.xlu1 %765, %v324_v7  }
  0x23   : > { %766 = vset.pattern.permute.xlu0 %v794_v17 }
  0x24   : > { %504 = vperm.xlu0 %766, %v323_v10  }
  0x26   : > { %512 = vperm.xlu1 %765, %v325_v9  }
  0x28   : > { %516 = vperm.xlu0 %766, %v326_v14  }
  0x2a   : > { %520 = vperm.xlu1 %765, %v327_v13  }
  0x2c   : > { %524 = vperm.xlu0 %766, %v328_v16  }
  0x8c   : > { %v343_v18 = vpop.permute.xlu1 %342 }
  0x8d   : > { %v371_v59 = vmul.f32 %v689_v29, %v343_v18 }
  0x8e   : > { %v333_v19 = vpop.permute.xlu0 %332 }
  0x8f   : > { %v369_v32 = vmul.f32 %v689_v29, %v333_v19 }
  0x90   : > { %v348_v20 = vpop.permute.xlu1 %347 }
  0x91   : > { %v372_v9 = vmul.f32 %v689_v29, %v348_v20 }
  0x92   : > { %v338_v21 = vpop.permute.xlu0 %337 }
  0x93   : > { %v370_v41 = vmul.f32 %v689_v29, %v338_v21 }
  0x94   : > { %v358_v22 = vpop.permute.xlu1 %357 }
  0x95   : > { %v374_v45 = vmul.f32 %v689_v29, %v358_v22 }
  0x96   : > { %v353_v23 = vpop.permute.xlu0 %352 }
  0x97   : > { %v373_v33 = vmul.f32 %v689_v29, %v353_v23 }
  0x99   : > { %v501_v24 = vpop.permute.xlu1 %500 }
  0x9a   : > { %v363_v25 = vpop.permute.xlu0 %362  ;;  %v531_v34 = vmul.f32 %v697_v30, %v501_v24 }
  0x9b   : > { %v375_v60 = vmul.f32 %v689_v29, %v363_v25 }
  0x9d   : > { %v509_v26 = vpop.permute.xlu1 %508 }
  0x9e   : > { %v533_v63 = vmul.f32 %v697_v30, %v509_v26 }
  0x9f   : > { %v505_v27 = vpop.permute.xlu0 %504 }
  0xa0   : > { %v532_v46 = vmul.f32 %v697_v30, %v505_v27 }
  0xa1   : > { %v513_v28 = vpop.permute.xlu1 %512 }
  0xa2   : > { %v534_v13 = vmul.f32 %v697_v30, %v513_v28 }
  0xa3   : > { %v517_v31 = vpop.permute.xlu0 %516 }
  0xa4   : > { %v535_v35 = vmul.f32 %v697_v30, %v517_v31 }
  0xa5   : > { %v521_v38 = vpop.permute.xlu1 %520 }
  0xa6   : > { %v536_v49 = vmul.f32 %v697_v30, %v521_v38 }
  0xa7   : > { %v525_v54 = vpop.permute.xlu0 %524 }
  0xa8   : > { %v537_v0 = vmul.f32 %v697_v30, %v525_v54 }
  0xd1   : > { %v464_v36 = vpop.f32.mrf.mxu0 }
  0xd2   : > { %v484_v37 = vpop.f32.mrf.mxu1  ;;  %v465_v39 = vadd.f32 %v464_v36, %v369_v32 }
  0xd3   : > { %v485_v40 = vadd.f32 %v484_v37, %v373_v33  ;;  %v713_v43 = vpop.f32.mrf.mxu0 }
  0xd4   : > { %v725_v44 = vpop.f32.mrf.mxu1  ;;  %v538_v47 = vadd.f32 %v531_v34, %v465_v39 }
  0xd5   : > { %v542_v48 = vadd.f32 %v535_v35, %v485_v40  ;;  %v469_v50 = vpop.f32.mrf.mxu0 }
  0xd6   : > { %v489_v51 = vpop.f32.mrf.mxu1  ;;  %v552_v52 = vadd.f32 %v698_v42, %v538_v47  ;;  %v470_v55 = vadd.f32 %v469_v50, %v370_v41 }
  0xd7   : > { %v556_v53 = vadd.f32 %v698_v42, %v542_v48  ;;  %v490_v56 = vadd.f32 %v489_v51, %v374_v45  ;;  %v716_v57 = vpop.f32.mrf.mxu0 }
  0xd8   : > { %v728_v58 = vpop.f32.mrf.mxu1  ;;  %560 = vst.msk [vmem:[%s896_s15] sm:$0xff] %vm559_vm2, %v552_v52  ;;  %v539_v61 = vadd.f32 %v532_v46, %v470_v55 }
  0xd9   : > { %564 = vst.msk [vmem:[%s896_s15 + $0x20] sm:$0xff] %vm559_vm2, %v556_v53  ;;  %v543_v62 = vadd.f32 %v536_v49, %v490_v56  ;;  %v474_v1 = vpop.f32.mrf.mxu0 }
  0xda   : > { %v494_v2 = vpop.f32.mrf.mxu1  ;;  %v553_v3 = vadd.f32 %v698_v42, %v539_v61  ;;  %v475_v5 = vadd.f32 %v474_v1, %v371_v59 }
  0xdb   : > { %v557_v4 = vadd.f32 %v698_v42, %v543_v62  ;;  %v495_v6 = vadd.f32 %v494_v2, %v375_v60  ;;  %v719_v7 = vpop.f32.mrf.mxu0 }
  0xdc   : > { %v731_v8 = vpop.f32.mrf.mxu1  ;;  %561 = vst.msk [vmem:[%s896_s15 + $0x8] sm:$0xff] %vm559_vm2, %v553_v3  ;;  %v540_v10 = vadd.f32 %v533_v63, %v475_v5 }
  0xdd   : > { %565 = vst.msk [vmem:[%s896_s15 + $0x28] sm:$0xff] %vm559_vm2, %v557_v4  ;;  %v544_v11 = vadd.f32 %v537_v0, %v495_v6  ;;  %v479_v12 = vpop.f32.mrf.mxu0 }
  0xde   : > { %v554_v14 = vadd.f32 %v698_v42, %v540_v10  ;;  %v480_v16 = vadd.f32 %v479_v12, %v372_v9 }
  0xdf   : > { %v558_v15 = vadd.f32 %v698_v42, %v544_v11  ;;  %v722_v17 = vpop.f32.mrf.mxu0 }
  0xe0   : > { %562 = vst.msk [vmem:[%s896_s15 + $0x10] sm:$0xff] %vm559_vm2, %v554_v14  ;;  %v541_v18 = vadd.f32 %v534_v13, %v480_v16 }
  0xe1   : > { %566 = vst.msk [vmem:[%s896_s15 + $0x30] sm:$0xff] %vm559_vm2, %v558_v15 }
  0xe2   : > { %v555_v19 = vadd.f32 %v698_v42, %v541_v18 }
  0xe4   : > { %563 = vst.msk [vmem:[%s896_s15 + $0x18] sm:$0xff] %vm559_vm2, %v555_v19 }
  0xe5 PF: > { %s15_s20 = sadd.s32 1, %s789_s20   ;;  %s927_s18 = smov %s785_s19 }
  0xe6   : > { %p12_p5 = scmp.ge.s32.totalorder %s15_s20, 4   ;;  %s928_s19 = smov %s930_s21 }
  0xe8   :  { %14 = sbr.rel (!%p12_p5) target bundleno = 2 (0x2), region = 76 }

</bundles_post_ra>
